<compile_context>
chip_gen: v5e
topology: v5e:2x2
jax: 0.10.0
libtpu: 0.0.40
codegen_flags: <defaults>
</compile_context>

<pallas_src>
import functools
import math

import jax
import jax.numpy as jnp
from jax.experimental import pallas as pl
from jax.experimental.pallas import tpu as pltpu


def _round_up(x, m):
    return ((x + m - 1) // m) * m


def _mlp_kernel(*refs):
    # refs = (x_ref, w1, b1, w2, b2, ..., wL, bL, out_ref)
    x_ref = refs[0]
    out_ref = refs[-1]
    params = refs[1:-1]
    n_layers = len(params) // 2

    # Cast the activation tile to bf16 in-kernel (avoids a separate HBM cast pass).
    h = x_ref[...].astype(jnp.bfloat16)
    for i in range(n_layers):
        w = params[2 * i][...]                       # bf16 (in_i, out_i)
        b = params[2 * i + 1][...]                   # f32  (1, out_i)
        acc = jnp.dot(h, w, preferred_element_type=jnp.float32) + b
        if i < n_layers - 1:
            # ReLU(Dropout(.)) == ReLU(.) in eval mode; done in bf16 for the next MXU pass.
            h = jnp.maximum(acc.astype(jnp.bfloat16), 0)
        else:
            out_ref[...] = acc.astype(out_ref.dtype)  # drop_last=True: no final ReLU


def prepare_params(weights, biases, lane=128):
    """One-time parameter prep (hoisted out of the hot path).

    * Transpose PyTorch (out, in) -> (in, out); weights -> bf16 (MXU), biases stay f32.
    * Zero-pad HIDDEN layer widths to a multiple of 128 lanes (weight cols + bias), and
      the following layer's weight rows to match, so inter-layer VPU work is lane-dense.
      Padded columns stay exactly 0 through bias-add and ReLU (all padding is zeros).
    * The FINAL layer output width is left UNPADDED so the kernel writes exactly the
      needed f32 bytes back to HBM.
    """
    params = []
    n = len(weights)
    prev_out_pad = None
    for i, (w, b) in enumerate(zip(weights, biases)):
        wt = jnp.asarray(w, jnp.float32).T                 # (in_i, out_i)
        bt = jnp.asarray(b, jnp.float32).reshape(1, -1)    # (1, out_i)
        in_i, out_i = wt.shape
        if prev_out_pad is not None and prev_out_pad != in_i:
            wt = jnp.pad(wt, ((0, prev_out_pad - in_i), (0, 0)))
        if i < n - 1:
            out_pad = _round_up(out_i, lane)
            if out_pad != out_i:
                wt = jnp.pad(wt, ((0, 0), (0, out_pad - out_i)))
                bt = jnp.pad(bt, ((0, 0), (0, out_pad - out_i)))
            prev_out_pad = out_pad
        params.append(wt.astype(jnp.bfloat16))
        params.append(bt)
    return tuple(params)


def _param_spec(shape, single_buffer):
    if single_buffer:
        # Constant-index, VMEM-resident parameter block; single-buffered (no point
        # double-buffering a block that never changes) -> halves its VMEM footprint.
        return pl.BlockSpec(shape, lambda i: (0, 0), pipeline_mode=pl.Buffered(1))
    return pl.BlockSpec(shape, lambda i: (0, 0))


@functools.partial(jax.jit, static_argnames=("out_dim", "single_buffer_params"))
def dnn_forward(x, params_flat, *, out_dim, single_buffer_params=True):
    """x: (batch, n_feat, emb) or (batch, D) float32. params_flat: prepare_params output."""
    batch = x.shape[0]
    x2d = x.reshape(batch, -1)                 # autoMatch reshape (metadata only; cast in-kernel)
    d_in = x2d.shape[1]

    # Batch tiling: large tiles (<=2048 rows), rows a multiple of 16 (bf16 sublane
    # packing), and >=2 grid steps whenever the batch allows (v7x megacore sharding).
    b16 = _round_up(batch, 16)
    n_steps = pl.cdiv(b16, 2048)
    if b16 >= 32:
        n_steps = max(n_steps, 2)
    tb = _round_up(pl.cdiv(b16, n_steps), 16)
    batch_pad = _round_up(batch, tb)
    if batch_pad != batch:                     # skipped entirely when batch is tile-aligned
        x2d = jnp.pad(x2d, ((0, batch_pad - batch), (0, 0)))
    grid = (batch_pad // tb,)

    in_specs = [pl.BlockSpec((tb, d_in), lambda i: (i, 0))]
    for p in params_flat:
        in_specs.append(_param_spec(p.shape, single_buffer_params))
    out_specs = pl.BlockSpec((tb, out_dim), lambda i: (i, 0))   # unpadded, lane dim = full dim

    # Explicit VMEM budget (never below the 32 MiB default; generous headroom).
    param_bytes = sum(int(p.size) * p.dtype.itemsize for p in params_flat)
    param_bufs = 1 if single_buffer_params else 2
    act_w = max([d_in] + [int(p.shape[1]) for p in params_flat[::2]])
    vmem_need = (2 * tb * d_in * x2d.dtype.itemsize     # x double-buffer
                 + 2 * tb * out_dim * 4                 # out double-buffer (f32)
                 + param_bufs * param_bytes
                 + 4 * tb * act_w * 4)                  # live activations / accumulators
    vmem_limit = int(min(max(32 << 20, 2 * vmem_need + (4 << 20)), 100 << 20))

    # Advisory cost estimate for the scheduler.
    flops = sum(2 * batch_pad * int(w.shape[0]) * int(w.shape[1]) for w in params_flat[::2])
    bytes_accessed = int(x2d.size) * x2d.dtype.itemsize + batch_pad * out_dim * 4 + param_bytes

    out = pl.pallas_call(
        _mlp_kernel,
        out_shape=jax.ShapeDtypeStruct((batch_pad, out_dim), jnp.float32),
        grid=grid,
        in_specs=in_specs,
        out_specs=out_specs,
        compiler_params=pltpu.CompilerParams(
            dimension_semantics=("parallel",),
            vmem_limit_bytes=vmem_limit),
        cost_estimate=pl.CostEstimate(
            flops=int(flops), transcendentals=0, bytes_accessed=int(bytes_accessed)),
    )(x2d, *params_flat)

    if batch_pad != batch:
        out = out[:batch]
    return out


def init_params(key, shape_list):
    """Deterministic init mirroring the module:
       hidden layers: weight ~ N(0, 0.01), final: xavier_normal(gain=1.414),
       biases: PyTorch Linear default U(-1/sqrt(fan_in), 1/sqrt(fan_in))."""
    weights, biases = [], []
    n_layers = len(shape_list) - 1
    for i in range(n_layers):
        fan_in, fan_out = shape_list[i], shape_list[i + 1]
        key, kw, kb = jax.random.split(key, 3)
        if i < n_layers - 1:
            w = 0.01 * jax.random.normal(kw, (fan_out, fan_in), jnp.float32)
        else:
            std = 1.414 * math.sqrt(2.0 / (fan_in + fan_out))
            w = std * jax.random.normal(kw, (fan_out, fan_in), jnp.float32)
        bound = 1.0 / math.sqrt(fan_in)
        b = jax.random.uniform(kb, (fan_out,), jnp.float32, -bound, bound)
        weights.append(w)
        biases.append(b)
    return weights, biases


def reference_forward(x, weights, biases):
    """Pure-JAX reference that matches the kernel's dtype flow (bf16 MXU, f32 accum)."""
    h = x.reshape(x.shape[0], -1).astype(jnp.bfloat16)
    n = len(weights)
    for i, (w, b) in enumerate(zip(weights, biases)):
        wt = jnp.asarray(w, jnp.float32).T.astype(jnp.bfloat16)
        acc = jnp.dot(h, wt, preferred_element_type=jnp.float32) + jnp.asarray(b, jnp.float32)
        if i < n - 1:
            h = jnp.maximum(acc.astype(jnp.bfloat16), 0)
        else:
            h = acc
    return h


if __name__ == "__main__":
    key = jax.random.PRNGKey(0)

    # config: len(feature_stastic) - 1 = 4 features, embedding_size = 8
    n_feat, emb = 4, 8
    batch = 64                                    # tile-aligned -> no pad / slice copy passes
    Shape = [n_feat * emb, 64, 32, 16]            # autoMatch sets Shape[0] = n_feat * emb

    key, kx, kp = jax.random.split(key, 3)
    x = jax.random.normal(kx, (batch, n_feat, emb), jnp.float32)
    weights, biases = init_params(kp, Shape)

    params_flat = prepare_params(weights, biases)  # one-time prep (hoisted glue)
    try:
        out = dnn_forward(x, params_flat, out_dim=Shape[-1], single_buffer_params=True)
        out = jax.block_until_ready(out)
    except Exception:
        # Fallback if this jax build rejects pipeline_mode=pl.Buffered(1) on BlockSpec.
        out = dnn_forward(x, params_flat, out_dim=Shape[-1], single_buffer_params=False)
        out = jax.block_until_ready(out)

    ref = reference_forward(x, weights, biases)
    assert out.shape == (batch, Shape[-1])
    assert jnp.allclose(out, ref, atol=1e-3, rtol=1e-3), float(jnp.max(jnp.abs(out - ref)))

    # Also sanity-check against a pure-f32 reference (bf16 rounding tolerance).
    h = x.reshape(batch, -1)
    for i, (w, b) in enumerate(zip(weights, biases)):
        h = h @ w.T + b
        if i < len(weights) - 1:
            h = jnp.maximum(h, 0.0)
    assert jnp.allclose(out, h, atol=5e-2, rtol=5e-2)

    print("KERNEL_OK")
</pallas_src>

<mosaic_0001>
module attributes {stable_mosaic.version = 11 : i64} {
  func.func @_mlp_kernel(%arg0: i32, %arg1: memref<32x32xf32, #tpu.memory_space<vmem>>, %arg2: memref<32x128xbf16, #tpu.memory_space<vmem>>, %arg3: memref<1x128xf32, #tpu.memory_space<vmem>>, %arg4: memref<128x128xbf16, #tpu.memory_space<vmem>>, %arg5: memref<1x128xf32, #tpu.memory_space<vmem>>, %arg6: memref<128x16xbf16, #tpu.memory_space<vmem>>, %arg7: memref<1x16xf32, #tpu.memory_space<vmem>>, %arg8: memref<32x16xf32, #tpu.memory_space<vmem>>) attributes {dimension_semantics = [#tpu.dimension_semantics<parallel>], iteration_bounds = array<i64: 2>, scalar_prefetch = 0 : i64, scratch_operands = 0 : i64, tpu.core_type = #tpu.core_type<tc>, window_params = [{transform_indices = @transform_0, window_bounds = array<i64: 32, 32>}, {pipeline_mode = #tpu.pipeline_mode<synchronous>, transform_indices = @transform_1, window_bounds = array<i64: 32, 128>}, {pipeline_mode = #tpu.pipeline_mode<synchronous>, transform_indices = @transform_2, window_bounds = array<i64: 1, 128>}, {pipeline_mode = #tpu.pipeline_mode<synchronous>, transform_indices = @transform_3, window_bounds = array<i64: 128, 128>}, {pipeline_mode = #tpu.pipeline_mode<synchronous>, transform_indices = @transform_4, window_bounds = array<i64: 1, 128>}, {pipeline_mode = #tpu.pipeline_mode<synchronous>, transform_indices = @transform_5, window_bounds = array<i64: 128, 16>}, {pipeline_mode = #tpu.pipeline_mode<synchronous>, transform_indices = @transform_6, window_bounds = array<i64: 1, 16>}, {transform_indices = @transform_7, window_bounds = array<i64: 32, 16>}]} {
    %c0 = arith.constant 0 : index
    %c0_0 = arith.constant 0 : index
    %0 = vector.load %arg1[%c0, %c0_0] : memref<32x32xf32, #tpu.memory_space<vmem>>, vector<32x32xf32>
    %1 = arith.truncf %0 : vector<32x32xf32> to vector<32x32xbf16>
    %c0_1 = arith.constant 0 : index
    %c0_2 = arith.constant 0 : index
    %2 = vector.load %arg2[%c0_1, %c0_2] : memref<32x128xbf16, #tpu.memory_space<vmem>>, vector<32x128xbf16>
    %c0_3 = arith.constant 0 : index
    %c0_4 = arith.constant 0 : index
    %3 = vector.load %arg3[%c0_3, %c0_4] : memref<1x128xf32, #tpu.memory_space<vmem>>, vector<1x128xf32>
    %cst = arith.constant dense<0.000000e+00> : vector<32x128xf32>
    %4 = tpu.matmul %1, %2, %cst {dimension_numbers = #tpu.dot_dimension_numbers<[1], [0], [0], [1], [0, 0, 1, 1], [], []>} : vector<32x32xbf16>, vector<32x128xbf16>, vector<32x128xf32> -> vector<32x128xf32>
    %5 = vector.broadcast %3 : vector<1x128xf32> to vector<32x128xf32>
    %6 = arith.addf %4, %5 : vector<32x128xf32>
    %7 = arith.truncf %6 : vector<32x128xf32> to vector<32x128xbf16>
    %cst_5 = arith.constant 0.000000e+00 : bf16
    %8 = vector.broadcast %cst_5 : bf16 to vector<32x128xbf16>
    %9 = arith.maximumf %7, %8 : vector<32x128xbf16>
    %c0_6 = arith.constant 0 : index
    %c0_7 = arith.constant 0 : index
    %10 = vector.load %arg4[%c0_6, %c0_7] : memref<128x128xbf16, #tpu.memory_space<vmem>>, vector<128x128xbf16>
    %c0_8 = arith.constant 0 : index
    %c0_9 = arith.constant 0 : index
    %11 = vector.load %arg5[%c0_8, %c0_9] : memref<1x128xf32, #tpu.memory_space<vmem>>, vector<1x128xf32>
    %cst_10 = arith.constant dense<0.000000e+00> : vector<32x128xf32>
    %12 = tpu.matmul %9, %10, %cst_10 {dimension_numbers = #tpu.dot_dimension_numbers<[1], [0], [0], [1], [0, 0, 1, 1], [], []>} : vector<32x128xbf16>, vector<128x128xbf16>, vector<32x128xf32> -> vector<32x128xf32>
    %13 = vector.broadcast %11 : vector<1x128xf32> to vector<32x128xf32>
    %14 = arith.addf %12, %13 : vector<32x128xf32>
    %15 = arith.truncf %14 : vector<32x128xf32> to vector<32x128xbf16>
    %cst_11 = arith.constant 0.000000e+00 : bf16
    %16 = vector.broadcast %cst_11 : bf16 to vector<32x128xbf16>
    %17 = arith.maximumf %15, %16 : vector<32x128xbf16>
    %c0_12 = arith.constant 0 : index
    %c0_13 = arith.constant 0 : index
    %18 = vector.load %arg6[%c0_12, %c0_13] : memref<128x16xbf16, #tpu.memory_space<vmem>>, vector<128x16xbf16>
    %c0_14 = arith.constant 0 : index
    %c0_15 = arith.constant 0 : index
    %19 = vector.load %arg7[%c0_14, %c0_15] : memref<1x16xf32, #tpu.memory_space<vmem>>, vector<1x16xf32>
    %cst_16 = arith.constant dense<0.000000e+00> : vector<32x16xf32>
    %20 = tpu.matmul %17, %18, %cst_16 {dimension_numbers = #tpu.dot_dimension_numbers<[1], [0], [0], [1], [0, 0, 1, 1], [], []>} : vector<32x128xbf16>, vector<128x16xbf16>, vector<32x16xf32> -> vector<32x16xf32>
    %21 = vector.broadcast %19 : vector<1x16xf32> to vector<32x16xf32>
    %22 = arith.addf %20, %21 : vector<32x16xf32>
    %c0_17 = arith.constant 0 : index
    %c0_18 = arith.constant 0 : index
    %23 = vector.load %arg8[%c0_17, %c0_18] : memref<32x16xf32, #tpu.memory_space<vmem>>, vector<32x16xf32>
    tpu.vector_store %arg8[%c0_17, %c0_18], %22 {strides = array<i32>} : memref<32x16xf32, #tpu.memory_space<vmem>>, vector<32x16xf32>,
    return
  }
  func.func @transform_0(%arg0: i32) -> (i32, i32) {
    %c0_i32 = arith.constant 0 : i32
    %c0_i32_0 = arith.constant 0 : i32
    return %arg0, %c0_i32 : i32, i32
  }
  func.func @transform_1(%arg0: i32) -> (i32, i32) {
    %c0_i32 = arith.constant 0 : i32
    %c0_i32_0 = arith.constant 0 : i32
    %c0_i32_1 = arith.constant 0 : i32
    return %c0_i32, %c0_i32_0 : i32, i32
  }
  func.func @transform_2(%arg0: i32) -> (i32, i32) {
    %c0_i32 = arith.constant 0 : i32
    %c0_i32_0 = arith.constant 0 : i32
    %c0_i32_1 = arith.constant 0 : i32
    return %c0_i32, %c0_i32_0 : i32, i32
  }
  func.func @transform_3(%arg0: i32) -> (i32, i32) {
    %c0_i32 = arith.constant 0 : i32
    %c0_i32_0 = arith.constant 0 : i32
    %c0_i32_1 = arith.constant 0 : i32
    return %c0_i32, %c0_i32_0 : i32, i32
  }
  func.func @transform_4(%arg0: i32) -> (i32, i32) {
    %c0_i32 = arith.constant 0 : i32
    %c0_i32_0 = arith.constant 0 : i32
    %c0_i32_1 = arith.constant 0 : i32
    return %c0_i32, %c0_i32_0 : i32, i32
  }
  func.func @transform_5(%arg0: i32) -> (i32, i32) {
    %c0_i32 = arith.constant 0 : i32
    %c0_i32_0 = arith.constant 0 : i32
    %c0_i32_1 = arith.constant 0 : i32
    return %c0_i32, %c0_i32_0 : i32, i32
  }
  func.func @transform_6(%arg0: i32) -> (i32, i32) {
    %c0_i32 = arith.constant 0 : i32
    %c0_i32_0 = arith.constant 0 : i32
    %c0_i32_1 = arith.constant 0 : i32
    return %c0_i32, %c0_i32_0 : i32, i32
  }
  func.func @transform_7(%arg0: i32) -> (i32, i32) {
    %c0_i32 = arith.constant 0 : i32
    %c0_i32_0 = arith.constant 0 : i32
    return %arg0, %c0_i32 : i32, i32
  }
}

module attributes {stable_mosaic.version = 11 : i64} {
  func.func @_mlp_kernel(%arg0: i32, %arg1: memref<32x32xf32, #tpu.memory_space<vmem>>, %arg2: memref<32x128xbf16, #tpu.memory_space<vmem>>, %arg3: memref<1x128xf32, #tpu.memory_space<vmem>>, %arg4: memref<128x128xbf16, #tpu.memory_space<vmem>>, %arg5: memref<1x128xf32, #tpu.memory_space<vmem>>, %arg6: memref<128x16xbf16, #tpu.memory_space<vmem>>, %arg7: memref<1x16xf32, #tpu.memory_space<vmem>>, %arg8: memref<32x16xf32, #tpu.memory_space<vmem>>) attributes {dimension_semantics = [#tpu.dimension_semantics<parallel>], iteration_bounds = array<i64: 2>, scalar_prefetch = 0 : i64, scratch_operands = 0 : i64, tpu.core_type = #tpu.core_type<tc>, window_params = [{transform_indices = @transform_0, window_bounds = array<i64: 32, 32>}, {pipeline_mode = #tpu.pipeline_mode<synchronous>, transform_indices = @transform_1, window_bounds = array<i64: 32, 128>}, {pipeline_mode = #tpu.pipeline_mode<synchronous>, transform_indices = @transform_2, window_bounds = array<i64: 1, 128>}, {pipeline_mode = #tpu.pipeline_mode<synchronous>, transform_indices = @transform_3, window_bounds = array<i64: 128, 128>}, {pipeline_mode = #tpu.pipeline_mode<synchronous>, transform_indices = @transform_4, window_bounds = array<i64: 1, 128>}, {pipeline_mode = #tpu.pipeline_mode<synchronous>, transform_indices = @transform_5, window_bounds = array<i64: 128, 16>}, {pipeline_mode = #tpu.pipeline_mode<synchronous>, transform_indices = @transform_6, window_bounds = array<i64: 1, 16>}, {transform_indices = @transform_7, window_bounds = array<i64: 32, 16>}]} {
    %c0 = arith.constant 0 : index
    %c0_0 = arith.constant 0 : index
    %0 = vector.load %arg1[%c0, %c0_0] : memref<32x32xf32, #tpu.memory_space<vmem>>, vector<32x32xf32>
    %1 = arith.truncf %0 : vector<32x32xf32> to vector<32x32xbf16>
    %c0_1 = arith.constant 0 : index
    %c0_2 = arith.constant 0 : index
    %2 = vector.load %arg2[%c0_1, %c0_2] : memref<32x128xbf16, #tpu.memory_space<vmem>>, vector<32x128xbf16>
    %c0_3 = arith.constant 0 : index
    %c0_4 = arith.constant 0 : index
    %3 = vector.load %arg3[%c0_3, %c0_4] : memref<1x128xf32, #tpu.memory_space<vmem>>, vector<1x128xf32>
    %cst = arith.constant dense<0.000000e+00> : vector<32x128xf32>
    %4 = tpu.matmul %1, %2, %cst {dimension_numbers = #tpu.dot_dimension_numbers<[1], [0], [0], [1], [0, 0, 1, 1], [], []>} : vector<32x32xbf16>, vector<32x128xbf16>, vector<32x128xf32> -> vector<32x128xf32>
    %5 = vector.broadcast %3 : vector<1x128xf32> to vector<32x128xf32>
    %6 = arith.addf %4, %5 : vector<32x128xf32>
    %7 = arith.truncf %6 : vector<32x128xf32> to vector<32x128xbf16>
    %cst_5 = arith.constant 0.000000e+00 : bf16
    %8 = vector.broadcast %cst_5 : bf16 to vector<32x128xbf16>
    %9 = arith.maximumf %7, %8 : vector<32x128xbf16>
    %c0_6 = arith.constant 0 : index
    %c0_7 = arith.constant 0 : index
    %10 = vector.load %arg4[%c0_6, %c0_7] : memref<128x128xbf16, #tpu.memory_space<vmem>>, vector<128x128xbf16>
    %c0_8 = arith.constant 0 : index
    %c0_9 = arith.constant 0 : index
    %11 = vector.load %arg5[%c0_8, %c0_9] : memref<1x128xf32, #tpu.memory_space<vmem>>, vector<1x128xf32>
    %cst_10 = arith.constant dense<0.000000e+00> : vector<32x128xf32>
    %12 = tpu.matmul %9, %10, %cst_10 {dimension_numbers = #tpu.dot_dimension_numbers<[1], [0], [0], [1], [0, 0, 1, 1], [], []>} : vector<32x128xbf16>, vector<128x128xbf16>, vector<32x128xf32> -> vector<32x128xf32>
    %13 = vector.broadcast %11 : vector<1x128xf32> to vector<32x128xf32>
    %14 = arith.addf %12, %13 : vector<32x128xf32>
    %15 = arith.truncf %14 : vector<32x128xf32> to vector<32x128xbf16>
    %cst_11 = arith.constant 0.000000e+00 : bf16
    %16 = vector.broadcast %cst_11 : bf16 to vector<32x128xbf16>
    %17 = arith.maximumf %15, %16 : vector<32x128xbf16>
    %c0_12 = arith.constant 0 : index
    %c0_13 = arith.constant 0 : index
    %18 = vector.load %arg6[%c0_12, %c0_13] : memref<128x16xbf16, #tpu.memory_space<vmem>>, vector<128x16xbf16>
    %c0_14 = arith.constant 0 : index
    %c0_15 = arith.constant 0 : index
    %19 = vector.load %arg7[%c0_14, %c0_15] : memref<1x16xf32, #tpu.memory_space<vmem>>, vector<1x16xf32>
    %cst_16 = arith.constant dense<0.000000e+00> : vector<32x16xf32>
    %20 = tpu.matmul %17, %18, %cst_16 {dimension_numbers = #tpu.dot_dimension_numbers<[1], [0], [0], [1], [0, 0, 1, 1], [], []>} : vector<32x128xbf16>, vector<128x16xbf16>, vector<32x16xf32> -> vector<32x16xf32>
    %21 = vector.broadcast %19 : vector<1x16xf32> to vector<32x16xf32>
    %22 = arith.addf %20, %21 : vector<32x16xf32>
    %c0_17 = arith.constant 0 : index
    %c0_18 = arith.constant 0 : index
    %23 = vector.load %arg8[%c0_17, %c0_18] : memref<32x16xf32, #tpu.memory_space<vmem>>, vector<32x16xf32>
    tpu.vector_store %arg8[%c0_17, %c0_18], %22 {strides = array<i32>} : memref<32x16xf32, #tpu.memory_space<vmem>>, vector<32x16xf32>,
    return
  }
  func.func @transform_0(%arg0: i32) -> (i32, i32) {
    %c0_i32 = arith.constant 0 : i32
    %c0_i32_0 = arith.constant 0 : i32
    return %arg0, %c0_i32 : i32, i32
  }
  func.func @transform_1(%arg0: i32) -> (i32, i32) {
    %c0_i32 = arith.constant 0 : i32
    %c0_i32_0 = arith.constant 0 : i32
    %c0_i32_1 = arith.constant 0 : i32
    return %c0_i32, %c0_i32_0 : i32, i32
  }
  func.func @transform_2(%arg0: i32) -> (i32, i32) {
    %c0_i32 = arith.constant 0 : i32
    %c0_i32_0 = arith.constant 0 : i32
    %c0_i32_1 = arith.constant 0 : i32
    return %c0_i32, %c0_i32_0 : i32, i32
  }
  func.func @transform_3(%arg0: i32) -> (i32, i32) {
    %c0_i32 = arith.constant 0 : i32
    %c0_i32_0 = arith.constant 0 : i32
    %c0_i32_1 = arith.constant 0 : i32
    return %c0_i32, %c0_i32_0 : i32, i32
  }
  func.func @transform_4(%arg0: i32) -> (i32, i32) {
    %c0_i32 = arith.constant 0 : i32
    %c0_i32_0 = arith.constant 0 : i32
    %c0_i32_1 = arith.constant 0 : i32
    return %c0_i32, %c0_i32_0 : i32, i32
  }
  func.func @transform_5(%arg0: i32) -> (i32, i32) {
    %c0_i32 = arith.constant 0 : i32
    %c0_i32_0 = arith.constant 0 : i32
    %c0_i32_1 = arith.constant 0 : i32
    return %c0_i32, %c0_i32_0 : i32, i32
  }
  func.func @transform_6(%arg0: i32) -> (i32, i32) {
    %c0_i32 = arith.constant 0 : i32
    %c0_i32_0 = arith.constant 0 : i32
    %c0_i32_1 = arith.constant 0 : i32
    return %c0_i32, %c0_i32_0 : i32, i32
  }
  func.func @transform_7(%arg0: i32) -> (i32, i32) {
    %c0_i32 = arith.constant 0 : i32
    %c0_i32_0 = arith.constant 0 : i32
    return %arg0, %c0_i32 : i32, i32
  }
}

</mosaic_0001>

<bundles_post_ra>
// kernel: dnn_forward.1
= control target key start
LH: loop header
LB: loop body
LE: loop exit
PB: predicated region body
PF: predicated region fallthrough
CT: control target
= control target key end

     0   :  { %s776_s24 = smov 0   ;;  %s863_s0 = inlined_call_operand.vmem [shape: f32[64,32], index: 0, kind: input, shape index: {}]   ;;  %s864_s1 = inlined_call_operand.vmem [shape: bf16[32,128], index: 1, kind: input, shape index: {}]   ;;  %s865_s2 = inlined_call_operand.vmem [shape: f32[1,128], index: 2, kind: input, shape index: {}]   ;;  %s866_s3 = inlined_call_operand.vmem [shape: bf16[128,128], index: 3, kind: input, shape index: {}]   ;;  %s867_s4 = inlined_call_operand.vmem [shape: f32[1,128], index: 4, kind: input, shape index: {}]   ;;  %s868_s5 = inlined_call_operand.vmem [shape: bf16[128,16], index: 5, kind: input, shape index: {}]   ;;  %s869_s6 = inlined_call_operand.vmem [shape: f32[1,16], index: 6, kind: input, shape index: {}]   ;;  %s870_s7 = inlined_call_operand.vmem [shape: f32[64,16], index: 7, kind: output, shape index: {}]  }
   0x1 LB: > { %s598_s25 = sadd.s32 4294967295, %s734_s24   ;;  %p602_p0 = scmp.ge.s32.totalorder %s734_s24, 1  ;;  %s734_s24 = sphi %s776_s24, %s17_s24  }
   0x2   : > { %p238_p1 = scmp.lt.s32.totalorder %s734_s24, 3 }
   0x4   : > { %p239_p2 = pnand %p602_p0, %p238_p1 }
   0x5   : > { %s603_s28 = sshll.u32 (!%p239_p2), %s598_s25, 2 }
   0x6   : > { %242 = sbr.rel (%p239_p2) target bundleno = 464 (0x1d0), region = 48  ;;  %p271_p3 = scmp.lt.s32.totalorder (!%p239_p2), %s603_s28, 7 }
   0xb   : > { %v684_v0 = vld [vmem:[%s864_s1 + $0x8] sm:$0xff]  ;;  %v692_v1 = vld [vmem:[%s866_s3 + $0x38] sm:$0xff]  ;;  %v683_v2 = vld [vmem:[%s864_s1] sm:$0xff]  ;;  %s872_s28 = smov (!%p271_p3, %s603_s28), 7  ;;  %vm309_vm0 = vcmask 261120   ;;  %vm537_vm1 = vcmask 130048  }
   0xc   : > { %322 = vmatpush.bf16.msra.mxu0 %v684_v0  ;;  %417 = vmatpush.bf16.msra.mxu1 %v692_v1  ;;  %v691_v3 = vld [vmem:[%s866_s3 + $0x30] sm:$0xff]  ;;  %s604_s12 = sshll.u32 %s872_s28, 3  ;;  %v690_v4 = vld [vmem:[%s866_s3 + $0x28] sm:$0xff]  ;;  %v689_v8 = vld [vmem:[%s866_s3 + $0x20] sm:$0xff] }
   0xd   : > { %701 = vmatpush.bf16.msra.mxu3 %v692_v1  ;;  %s274_s15 = scalar_lea.vmem %s863_s0, %s604_s12  ;;  %v688_v12 = vld [vmem:[%s866_s3 + $0x18] sm:$0xff]  ;;  %v687_v13 = vld [vmem:[%s866_s3 + $0x10] sm:$0xff]  ;;  %v686_v14 = vld [vmem:[%s866_s3 + $0x8] sm:$0xff]  ;;  %s280_s11 = scalar_lea.vmem %s870_s7, %s604_s12 }
   0xe   : > { %v283_v5 = vld [vmem:[%s274_s15] sm:$0xff]  ;;  %v284_v6 = vld [vmem:[%s274_s15 + $0x8] sm:$0xff]  ;;  %v285_v9 = vld [vmem:[%s274_s15 + $0x10] sm:$0xff] }
   0xf   : > { %v287_v7 = vpack.c.bf16 %v284_v6, %v283_v5  ;;  %v286_v10 = vld [vmem:[%s274_s15 + $0x18] sm:$0xff]  ;;  %v685_v15 = vld [vmem:[%s866_s3] sm:$0xff]  ;;  %v699_v18 = vld [vmem:[%s868_s5 + $0x30] sm:$0xff] }
  0x10   : > { %323 = vmatpush.bf16.msra.mxu0 %v683_v2  ;;  %418 = vmatpush.bf16.msra.mxu1 %v691_v3  ;;  %v288_v11 = vpack.c.bf16 %v286_v10, %v285_v9  ;;  %v700_v16 = vld [vmem:[%s868_s5 + $0x38] sm:$0xff]  ;;  %v725_v19 = vld [vmem:[%s865_s2] ss:$0 sm:$0xff]  ;;  %v698_v20 = vld [vmem:[%s868_s5 + $0x28] sm:$0xff] }
  0x11   : > { %702 = vmatpush.bf16.msra.mxu3 %v691_v3  ;;  %709 = vmatpush.bf16.msra.mxu2 %v700_v16  ;;  %v697_v24 = vld [vmem:[%s868_s5 + $0x20] sm:$0xff]  ;;  %v696_v35 = vld [vmem:[%s868_s5 + $0x18] sm:$0xff]  ;;  %v695_v36 = vld [vmem:[%s868_s5 + $0x10] sm:$0xff] }
  0x12   : > { %v694_v37 = vld [vmem:[%s868_s5 + $0x8] sm:$0xff]  ;;  %v693_v38 = vld [vmem:[%s868_s5] sm:$0xff] }
  0x13   : > { %615 = vmatmul.msk.bf16.vlgmr.msra.gmra.mxu0 %vm309_vm0, %v287_v7  ;;  %v726_v40 = vld [vmem:[%s867_s4] ss:$0 sm:$0xff] }
  0x14   : > { %419 = vmatpush.bf16.msra.mxu1 %v690_v4  ;;  %518 = vmatpush.bf16.msrb.mxu0 %v700_v16  ;;  %v727_v54 = vld [vmem:[%s869_s6] ss:$0 sm:$0xff] }
  0x15   : > { %703 = vmatpush.bf16.msra.mxu3 %v690_v4  ;;  %710 = vmatpush.bf16.msra.mxu2 %v699_v18 }
  0x18   : > { %420 = vmatpush.bf16.msra.mxu1 %v689_v8  ;;  %519 = vmatpush.bf16.msrb.mxu0 %v699_v18 }
  0x19   : > { %704 = vmatpush.bf16.msra.mxu3 %v689_v8  ;;  %711 = vmatpush.bf16.msra.mxu2 %v698_v20 }
  0x1c   : > { %421 = vmatpush.bf16.msra.mxu1 %v688_v12  ;;  %520 = vmatpush.bf16.msrb.mxu0 %v698_v20 }
  0x1d   : > { %705 = vmatpush.bf16.msra.mxu3 %v688_v12  ;;  %712 = vmatpush.bf16.msra.mxu2 %v697_v24 }
  0x20   : > { %422 = vmatpush.bf16.msra.mxu1 %v687_v13  ;;  %521 = vmatpush.bf16.msrb.mxu0 %v697_v24 }
  0x21   : > { %706 = vmatpush.bf16.msra.mxu3 %v687_v13  ;;  %713 = vmatpush.bf16.msra.mxu2 %v696_v35 }
  0x23   : > { %616 = vmatmul.msk.bf16.gmra.mxu0 %vm309_vm0, %v288_v11 }
  0x24   : > { %423 = vmatpush.bf16.msra.mxu1 %v686_v14  ;;  %522 = vmatpush.bf16.msrb.mxu0 %v696_v35 }
  0x25   : > { %707 = vmatpush.bf16.msra.mxu3 %v686_v14  ;;  %714 = vmatpush.bf16.msra.mxu2 %v695_v36 }
  0x28   : > { %424 = vmatpush.bf16.msra.mxu1 %v685_v15  ;;  %523 = vmatpush.bf16.msrb.mxu0 %v695_v36 }
  0x29   : > { %708 = vmatpush.bf16.msra.mxu3 %v685_v15  ;;  %715 = vmatpush.bf16.msra.mxu2 %v694_v37 }
  0x2c   : > { %524 = vmatpush.bf16.msrb.mxu0 %v694_v37 }
  0x2d   : > { %716 = vmatpush.bf16.msra.mxu2 %v693_v38 }
  0x30   : > { %525 = vmatpush.bf16.msrb.mxu0 %v693_v38 }
  0x90   : > { %v325_v17 = vpop.f32.mrf.mxu0 }
  0x91   : > { %v326_v21 = vadd.f32 %v725_v19, %v325_v17 }
  0x93   : > { %v343_v25 = vmax.f32 %v326_v21, 0.0 }
  0x98   : > { %v327_v22 = vpop.f32.mrf.mxu0 }
  0x99   : > { %v328_v23 = vadd.f32 %v725_v19, %v327_v22 }
  0x9b   : > { %v344_v26 = vmax.f32 %v328_v23, 0.0 }
  0x9d   : > { %v347_v27 = vpack.c.bf16 %v344_v26, %v343_v25 }
  0x9f   : > { %425 = vmatmul.bf16.vlgmr.msra.gmra.mxu1 %v347_v27 }
  0xa0   : > { %v330_v28 = vpop.f32.mrf.mxu0 }
  0xa1   : > { %v331_v29 = vadd.f32 %v725_v19, %v330_v28 }
  0xa3   : > { %v345_v32 = vmax.f32 %v331_v29, 0.0 }
  0xa8   : > { %v332_v30 = vpop.f32.mrf.mxu0 }
  0xa9   : > { %v333_v31 = vadd.f32 %v725_v19, %v332_v30 }
  0xab   : > { %v346_v33 = vmax.f32 %v333_v31, 0.0 }
  0xad   : > { %v348_v34 = vpack.c.bf16 %v346_v33, %v345_v32 }
  0xaf   : > { %430 = vmatmul.bf16.vlgmr.msra.gmra.mxu3 %v348_v34 }
 0x11c   : > { %v426_v39 = vpop.f32.mrf.mxu1 }
 0x11d   : > { %v427_v41 = vadd.f32 %v726_v40, %v426_v39 }
 0x11f   : > { %v444_v44 = vmax.f32 %v427_v41, 0.0 }
 0x124   : > { %v428_v42 = vpop.f32.mrf.mxu1 }
 0x125   : > { %v429_v43 = vadd.f32 %v726_v40, %v428_v42 }
 0x127   : > { %v445_v45 = vmax.f32 %v429_v43, 0.0 }
 0x129   : > { %v448_v46 = vpack.c.bf16 %v445_v45, %v444_v44 }
 0x12b   : > { %526 = vmatmul.bf16.vlgmr.msrb.gmra.mxu0 %v448_v46 }
 0x132   : > { %v431_v47 = vpop.f32.mrf.mxu3 }
 0x133   : > { %v432_v48 = vadd.f32 %v726_v40, %v431_v47 }
 0x135   : > { %v446_v51 = vmax.f32 %v432_v48, 0.0 }
 0x13a   : > { %v433_v49 = vpop.f32.mrf.mxu3 }
 0x13b   : > { %v434_v50 = vadd.f32 %v726_v40, %v433_v49 }
 0x13d   : > { %v447_v52 = vmax.f32 %v434_v50, 0.0 }
 0x13f   : > { %v449_v53 = vpack.c.bf16 %v447_v52, %v446_v51 }
 0x141   : > { %531 = vmatmul.bf16.vlgmr.msra.gmra.mxu2 %v449_v53 }
 0x1a8   : > { %v527_v55 = vpop.f32.mrf.mxu0 }
 0x1a9   : > { %v528_v56 = vadd.f32 %v727_v54, %v527_v55 }
 0x1ab   : > { %538 = vst.msk [vmem:[%s280_s11] sm:$0xff] %vm537_vm1, %v528_v56 }
 0x1b0   : > { %v529_v57 = vpop.f32.mrf.mxu0 }
 0x1b1   : > { %v530_v58 = vadd.f32 %v727_v54, %v529_v57 }
 0x1b3   : > { %539 = vst.msk [vmem:[%s280_s11 + $0x8] sm:$0xff] %vm537_vm1, %v530_v58 }
 0x1c4   : > { %v532_v59 = vpop.f32.mrf.mxu2 }
 0x1c5   : > { %v533_v60 = vadd.f32 %v727_v54, %v532_v59 }
 0x1c7   : > { %540 = vst.msk [vmem:[%s280_s11 + $0x10] sm:$0xff] %vm537_vm1, %v533_v60 }
 0x1cc   : > { %v534_v61 = vpop.f32.mrf.mxu2 }
 0x1cd   : > { %v535_v62 = vadd.f32 %v727_v54, %v534_v61 }
 0x1cf   : > { %541 = vst.msk [vmem:[%s280_s11 + $0x18] sm:$0xff] %vm537_vm1, %v535_v62 }
 0x1d0 PF: > { %s17_s24 = sadd.s32 1, %s734_s24  }
 0x1d1   : > { %p14_p4 = scmp.ge.s32.totalorder %s17_s24, 4  }
 0x1d3   :  { %16 = sbr.rel (!%p14_p4) target bundleno = 1 (0x1), region = 78 }

// kernel: dnn_forward.1
= control target key start
LH: loop header
LB: loop body
LE: loop exit
PB: predicated region body
PF: predicated region fallthrough
CT: control target
= control target key end

     0   :  { %s776_s24 = smov 0   ;;  %s863_s0 = inlined_call_operand.vmem [shape: f32[64,32], index: 0, kind: input, shape index: {}]   ;;  %s864_s1 = inlined_call_operand.vmem [shape: bf16[32,128], index: 1, kind: input, shape index: {}]   ;;  %s865_s2 = inlined_call_operand.vmem [shape: f32[1,128], index: 2, kind: input, shape index: {}]   ;;  %s866_s3 = inlined_call_operand.vmem [shape: bf16[128,128], index: 3, kind: input, shape index: {}]   ;;  %s867_s4 = inlined_call_operand.vmem [shape: f32[1,128], index: 4, kind: input, shape index: {}]   ;;  %s868_s5 = inlined_call_operand.vmem [shape: bf16[128,16], index: 5, kind: input, shape index: {}]   ;;  %s869_s6 = inlined_call_operand.vmem [shape: f32[1,16], index: 6, kind: input, shape index: {}]   ;;  %s870_s7 = inlined_call_operand.vmem [shape: f32[64,16], index: 7, kind: output, shape index: {}]  }
   0x1 LB: > { %s598_s25 = sadd.s32 4294967295, %s734_s24   ;;  %p602_p0 = scmp.ge.s32.totalorder %s734_s24, 1  ;;  %s734_s24 = sphi %s776_s24, %s17_s24  }
   0x2   : > { %p238_p1 = scmp.lt.s32.totalorder %s734_s24, 3 }
   0x4   : > { %p239_p2 = pnand %p602_p0, %p238_p1 }
   0x5   : > { %s603_s28 = sshll.u32 (!%p239_p2), %s598_s25, 2 }
   0x6   : > { %242 = sbr.rel (%p239_p2) target bundleno = 464 (0x1d0), region = 48  ;;  %p271_p3 = scmp.lt.s32.totalorder (!%p239_p2), %s603_s28, 7 }
   0xb   : > { %v684_v0 = vld [vmem:[%s864_s1 + $0x8] sm:$0xff]  ;;  %v692_v1 = vld [vmem:[%s866_s3 + $0x38] sm:$0xff]  ;;  %v683_v2 = vld [vmem:[%s864_s1] sm:$0xff]  ;;  %s872_s28 = smov (!%p271_p3, %s603_s28), 7  ;;  %vm309_vm0 = vcmask 261120   ;;  %vm537_vm1 = vcmask 130048  }
   0xc   : > { %322 = vmatpush.bf16.msra.mxu0 %v684_v0  ;;  %417 = vmatpush.bf16.msra.mxu1 %v692_v1  ;;  %v691_v3 = vld [vmem:[%s866_s3 + $0x30] sm:$0xff]  ;;  %s604_s12 = sshll.u32 %s872_s28, 3  ;;  %v690_v4 = vld [vmem:[%s866_s3 + $0x28] sm:$0xff]  ;;  %v689_v8 = vld [vmem:[%s866_s3 + $0x20] sm:$0xff] }
   0xd   : > { %701 = vmatpush.bf16.msra.mxu3 %v692_v1  ;;  %s274_s15 = scalar_lea.vmem %s863_s0, %s604_s12  ;;  %v688_v12 = vld [vmem:[%s866_s3 + $0x18] sm:$0xff]  ;;  %v687_v13 = vld [vmem:[%s866_s3 + $0x10] sm:$0xff]  ;;  %v686_v14 = vld [vmem:[%s866_s3 + $0x8] sm:$0xff]  ;;  %s280_s11 = scalar_lea.vmem %s870_s7, %s604_s12 }
   0xe   : > { %v283_v5 = vld [vmem:[%s274_s15] sm:$0xff]  ;;  %v284_v6 = vld [vmem:[%s274_s15 + $0x8] sm:$0xff]  ;;  %v285_v9 = vld [vmem:[%s274_s15 + $0x10] sm:$0xff] }
   0xf   : > { %v287_v7 = vpack.c.bf16 %v284_v6, %v283_v5  ;;  %v286_v10 = vld [vmem:[%s274_s15 + $0x18] sm:$0xff]  ;;  %v685_v15 = vld [vmem:[%s866_s3] sm:$0xff]  ;;  %v699_v18 = vld [vmem:[%s868_s5 + $0x30] sm:$0xff] }
  0x10   : > { %323 = vmatpush.bf16.msra.mxu0 %v683_v2  ;;  %418 = vmatpush.bf16.msra.mxu1 %v691_v3  ;;  %v288_v11 = vpack.c.bf16 %v286_v10, %v285_v9  ;;  %v700_v16 = vld [vmem:[%s868_s5 + $0x38] sm:$0xff]  ;;  %v725_v19 = vld [vmem:[%s865_s2] ss:$0 sm:$0xff]  ;;  %v698_v20 = vld [vmem:[%s868_s5 + $0x28] sm:$0xff] }
  0x11   : > { %702 = vmatpush.bf16.msra.mxu3 %v691_v3  ;;  %709 = vmatpush.bf16.msra.mxu2 %v700_v16  ;;  %v697_v24 = vld [vmem:[%s868_s5 + $0x20] sm:$0xff]  ;;  %v696_v35 = vld [vmem:[%s868_s5 + $0x18] sm:$0xff]  ;;  %v695_v36 = vld [vmem:[%s868_s5 + $0x10] sm:$0xff] }
  0x12   : > { %v694_v37 = vld [vmem:[%s868_s5 + $0x8] sm:$0xff]  ;;  %v693_v38 = vld [vmem:[%s868_s5] sm:$0xff] }
  0x13   : > { %615 = vmatmul.msk.bf16.vlgmr.msra.gmra.mxu0 %vm309_vm0, %v287_v7  ;;  %v726_v40 = vld [vmem:[%s867_s4] ss:$0 sm:$0xff] }
  0x14   : > { %419 = vmatpush.bf16.msra.mxu1 %v690_v4  ;;  %518 = vmatpush.bf16.msrb.mxu0 %v700_v16  ;;  %v727_v54 = vld [vmem:[%s869_s6] ss:$0 sm:$0xff] }
  0x15   : > { %703 = vmatpush.bf16.msra.mxu3 %v690_v4  ;;  %710 = vmatpush.bf16.msra.mxu2 %v699_v18 }
  0x18   : > { %420 = vmatpush.bf16.msra.mxu1 %v689_v8  ;;  %519 = vmatpush.bf16.msrb.mxu0 %v699_v18 }
  0x19   : > { %704 = vmatpush.bf16.msra.mxu3 %v689_v8  ;;  %711 = vmatpush.bf16.msra.mxu2 %v698_v20 }
  0x1c   : > { %421 = vmatpush.bf16.msra.mxu1 %v688_v12  ;;  %520 = vmatpush.bf16.msrb.mxu0 %v698_v20 }
  0x1d   : > { %705 = vmatpush.bf16.msra.mxu3 %v688_v12  ;;  %712 = vmatpush.bf16.msra.mxu2 %v697_v24 }
  0x20   : > { %422 = vmatpush.bf16.msra.mxu1 %v687_v13  ;;  %521 = vmatpush.bf16.msrb.mxu0 %v697_v24 }
  0x21   : > { %706 = vmatpush.bf16.msra.mxu3 %v687_v13  ;;  %713 = vmatpush.bf16.msra.mxu2 %v696_v35 }
  0x23   : > { %616 = vmatmul.msk.bf16.gmra.mxu0 %vm309_vm0, %v288_v11 }
  0x24   : > { %423 = vmatpush.bf16.msra.mxu1 %v686_v14  ;;  %522 = vmatpush.bf16.msrb.mxu0 %v696_v35 }
  0x25   : > { %707 = vmatpush.bf16.msra.mxu3 %v686_v14  ;;  %714 = vmatpush.bf16.msra.mxu2 %v695_v36 }
  0x28   : > { %424 = vmatpush.bf16.msra.mxu1 %v685_v15  ;;  %523 = vmatpush.bf16.msrb.mxu0 %v695_v36 }
  0x29   : > { %708 = vmatpush.bf16.msra.mxu3 %v685_v15  ;;  %715 = vmatpush.bf16.msra.mxu2 %v694_v37 }
  0x2c   : > { %524 = vmatpush.bf16.msrb.mxu0 %v694_v37 }
  0x2d   : > { %716 = vmatpush.bf16.msra.mxu2 %v693_v38 }
  0x30   : > { %525 = vmatpush.bf16.msrb.mxu0 %v693_v38 }
  0x90   : > { %v325_v17 = vpop.f32.mrf.mxu0 }
  0x91   : > { %v326_v21 = vadd.f32 %v725_v19, %v325_v17 }
  0x93   : > { %v343_v25 = vmax.f32 %v326_v21, 0.0 }
  0x98   : > { %v327_v22 = vpop.f32.mrf.mxu0 }
  0x99   : > { %v328_v23 = vadd.f32 %v725_v19, %v327_v22 }
  0x9b   : > { %v344_v26 = vmax.f32 %v328_v23, 0.0 }
  0x9d   : > { %v347_v27 = vpack.c.bf16 %v344_v26, %v343_v25 }
  0x9f   : > { %425 = vmatmul.bf16.vlgmr.msra.gmra.mxu1 %v347_v27 }
  0xa0   : > { %v330_v28 = vpop.f32.mrf.mxu0 }
  0xa1   : > { %v331_v29 = vadd.f32 %v725_v19, %v330_v28 }
  0xa3   : > { %v345_v32 = vmax.f32 %v331_v29, 0.0 }
  0xa8   : > { %v332_v30 = vpop.f32.mrf.mxu0 }
  0xa9   : > { %v333_v31 = vadd.f32 %v725_v19, %v332_v30 }
  0xab   : > { %v346_v33 = vmax.f32 %v333_v31, 0.0 }
  0xad   : > { %v348_v34 = vpack.c.bf16 %v346_v33, %v345_v32 }
  0xaf   : > { %430 = vmatmul.bf16.vlgmr.msra.gmra.mxu3 %v348_v34 }
 0x11c   : > { %v426_v39 = vpop.f32.mrf.mxu1 }
 0x11d   : > { %v427_v41 = vadd.f32 %v726_v40, %v426_v39 }
 0x11f   : > { %v444_v44 = vmax.f32 %v427_v41, 0.0 }
 0x124   : > { %v428_v42 = vpop.f32.mrf.mxu1 }
 0x125   : > { %v429_v43 = vadd.f32 %v726_v40, %v428_v42 }
 0x127   : > { %v445_v45 = vmax.f32 %v429_v43, 0.0 }
 0x129   : > { %v448_v46 = vpack.c.bf16 %v445_v45, %v444_v44 }
 0x12b   : > { %526 = vmatmul.bf16.vlgmr.msrb.gmra.mxu0 %v448_v46 }
 0x132   : > { %v431_v47 = vpop.f32.mrf.mxu3 }
 0x133   : > { %v432_v48 = vadd.f32 %v726_v40, %v431_v47 }
 0x135   : > { %v446_v51 = vmax.f32 %v432_v48, 0.0 }
 0x13a   : > { %v433_v49 = vpop.f32.mrf.mxu3 }
 0x13b   : > { %v434_v50 = vadd.f32 %v726_v40, %v433_v49 }
 0x13d   : > { %v447_v52 = vmax.f32 %v434_v50, 0.0 }
 0x13f   : > { %v449_v53 = vpack.c.bf16 %v447_v52, %v446_v51 }
 0x141   : > { %531 = vmatmul.bf16.vlgmr.msra.gmra.mxu2 %v449_v53 }
 0x1a8   : > { %v527_v55 = vpop.f32.mrf.mxu0 }
 0x1a9   : > { %v528_v56 = vadd.f32 %v727_v54, %v527_v55 }
 0x1ab   : > { %538 = vst.msk [vmem:[%s280_s11] sm:$0xff] %vm537_vm1, %v528_v56 }
 0x1b0   : > { %v529_v57 = vpop.f32.mrf.mxu0 }
 0x1b1   : > { %v530_v58 = vadd.f32 %v727_v54, %v529_v57 }
 0x1b3   : > { %539 = vst.msk [vmem:[%s280_s11 + $0x8] sm:$0xff] %vm537_vm1, %v530_v58 }
 0x1c4   : > { %v532_v59 = vpop.f32.mrf.mxu2 }
 0x1c5   : > { %v533_v60 = vadd.f32 %v727_v54, %v532_v59 }
 0x1c7   : > { %540 = vst.msk [vmem:[%s280_s11 + $0x10] sm:$0xff] %vm537_vm1, %v533_v60 }
 0x1cc   : > { %v534_v61 = vpop.f32.mrf.mxu2 }
 0x1cd   : > { %v535_v62 = vadd.f32 %v727_v54, %v534_v61 }
 0x1cf   : > { %541 = vst.msk [vmem:[%s280_s11 + $0x18] sm:$0xff] %vm537_vm1, %v535_v62 }
 0x1d0 PF: > { %s17_s24 = sadd.s32 1, %s734_s24  }
 0x1d1   : > { %p14_p4 = scmp.ge.s32.totalorder %s17_s24, 4  }
 0x1d3   :  { %16 = sbr.rel (!%p14_p4) target bundleno = 1 (0x1), region = 78 }

</bundles_post_ra>
